<compile_context>
chip_gen: v5e
topology: v5e:2x2
jax: 0.10.0
libtpu: 0.0.40
codegen_flags: <defaults>
</compile_context>

<pallas_src>
import functools

import numpy as np
import jax
import jax.numpy as jnp
from jax.experimental import pallas as pl
from jax.experimental.pallas import tpu as pltpu


D_MODEL = 32
MAX_LEN = 100
VAR_EPS = 1e-12   # module's own TF-style LayerNorm uses 1e-12 (not nn.LayerNorm's 1e-5)

_LANES = 128
_REPEAT_MATRIX_BYTES_CAP = 2 * 1024 * 1024   # cap the (bt, bt/rep) expansion matrix


def _cdiv(a, b):
    return (a + b - 1) // b


def _round_up(a, b):
    return _cdiv(a, b) * b


@functools.lru_cache(maxsize=None)
def _avg_matrix(w, d):
    # Block-diagonal segment-averaging matrix: avg[i, j] = 1/d iff i//d == j//d.
    seg = np.arange(w) // d
    return (seg[:, None] == seg[None, :]).astype(np.float32) / d


@functools.lru_cache(maxsize=None)
def _repeat_matrix(bt, rep):
    # 0/1 matrix R (bt, bt//rep) with R[j, j//rep] = 1: R @ table repeats each
    # table row `rep` times along sublanes (position -> lane-row expansion).
    rows = np.arange(bt) // rep
    cols = np.arange(bt // rep)
    return (rows[:, None] == cols[None, :]).astype(np.float32)


def _block_cap_lane_rows():
    # v7x (3.2 TB/s) is per-grid-step-overhead bound at 1024-row blocks; v5e/v6e
    # are already near roofline at 512-1024.
    try:
        kind = jax.devices()[0].device_kind.lower()
    except Exception:
        kind = ""
    if "v7" in kind or "7x" in kind:
        return 2048
    return 1024


def _ln_core(y, gamma, beta, avg):
    # Segmented mean / E[y^2] over each D-wide lane segment via two *independent*
    # block-diagonal averaging matmuls (MXU is idle in this mem-bound kernel;
    # HIGHEST precision keeps them f32-exact -- do not lower to DEFAULT).
    mean = jnp.dot(y, avg, preferred_element_type=jnp.float32,
                   precision=jax.lax.Precision.HIGHEST)
    msq = jnp.dot(y * y, avg, preferred_element_type=jnp.float32,
                  precision=jax.lax.Precision.HIGHEST)
    var = jnp.maximum(msq - mean * mean, 0.0)     # clamp: guards f32 cancellation
    inv = jax.lax.rsqrt(var + VAR_EPS)            # EUP, off the VALU path
    return (y - mean) * (inv * gamma) + beta      # gamma folded into the scale


def _kernel_direct(x_ref, pe_ref, gamma_ref, beta_ref, avg_ref, o_ref):
    # pe rows are already 1:1 with x lane-rows.
    y = x_ref[...].astype(jnp.float32) + pe_ref[...].astype(jnp.float32)
    out = _ln_core(y, gamma_ref[...], beta_ref[...], avg_ref[...])
    o_ref[...] = out.astype(o_ref.dtype)


def _kernel_expand(x_ref, pe_ref, rmat_ref, gamma_ref, beta_ref, avg_ref, o_ref):
    # pe_ref holds one 128-lane row per *position*; expand to one row per
    # lane-row (each position repeated rep times along sublanes) on the MXU.
    pe = jnp.dot(rmat_ref[...], pe_ref[...].astype(jnp.float32),
                 preferred_element_type=jnp.float32,
                 precision=jax.lax.Precision.HIGHEST)
    y = x_ref[...].astype(jnp.float32) + pe
    out = _ln_core(y, gamma_ref[...], beta_ref[...], avg_ref[...])
    o_ref[...] = out.astype(o_ref.dtype)


def learned_positional_encoding(x, pos_embed_w, gamma, beta, *, out_dtype=None):
    """x: (S, B, D); pos_embed_w: (max_len, D); gamma/beta: (D,).

    Pass out_dtype=jnp.bfloat16 to halve writeback traffic when the consumer
    tolerates it; internal math is always f32.
    """
    S, B, D = x.shape
    out_dtype = x.dtype if out_dtype is None else out_dtype

    # Lane-dense fold: pack G consecutive (row, D) vectors into one 128-lane row.
    G = _LANES // D if (D <= _LANES and _LANES % D == 0) else 1
    W = G * D
    n_rows = S * B

    pe_table = pos_embed_w[:S].astype(jnp.float32)                 # (S, D), tiny
    gamma_t = jnp.tile(gamma.astype(jnp.float32), G).reshape(1, W)
    beta_t = jnp.tile(beta.astype(jnp.float32), G).reshape(1, W)
    avg = jnp.asarray(_avg_matrix(W, D))

    compact_pe = (B % G == 0)   # every packed lane-row then holds a single position
    if compact_pe:
        rep = B // G            # lane-rows per position
        n_lrows = n_rows // G
        x_f = x.reshape(n_lrows, W)                                 # view, no copy
        pe_f = jnp.tile(pe_table, (1, G)) if G > 1 else pe_table    # (S, W), tiny
        n_pad_rows = 0
    else:
        # Fallback: packed lane-rows mix positions -> materialize pe at x-size.
        rep = 1
        pad = (-n_rows) % G     # <= G-1 rows, only when n_rows % G != 0
        x_rows = x.reshape(n_rows, D)
        pe_rows = jnp.broadcast_to(pe_table[:, None, :], (S, B, D)).reshape(n_rows, D)
        if pad:
            x_rows = jnp.pad(x_rows, ((0, pad), (0, 0)))
            pe_rows = jnp.pad(pe_rows, ((0, pad), (0, 0)))
        n_lrows = (n_rows + pad) // G
        x_f = x_rows.reshape(n_lrows, W)
        pe_f = pe_rows.reshape(n_lrows, W)
        n_pad_rows = pad

    # Block sizing: biggest block under the per-generation cap; multi-block grids
    # get an even block count so v7x's two TensorCores split the parallel axis.
    align = 8 * rep if rep > 1 else 8
    cap = _block_cap_lane_rows()
    if rep > 1:
        cap = min(cap, int((_REPEAT_MATRIX_BYTES_CAP // 4 * rep) ** 0.5))
    cap = max(align, (cap // align) * align)
    if n_lrows <= cap:
        bt = n_lrows            # single block; block == full dim (no (8,128) issue)
        nblocks = 1
    else:
        nblocks = _cdiv(n_lrows, cap)
        if nblocks % 2:
            nblocks += 1
        bt = min(cap, _round_up(_cdiv(n_lrows, nblocks), align))
        nblocks = _cdiv(n_lrows, bt)
    grid = (nblocks,)

    if compact_pe and rep > 1:
        bt_s = bt // rep
        # Zero-pad the (tiny) pe table so the expansion matmul never reads
        # out-of-bounds garbage (NaN would pollute valid rows through 0 * NaN).
        pe_rows_needed = nblocks * bt_s
        if pe_rows_needed > S:
            pe_f = jnp.pad(pe_f, ((0, pe_rows_needed - S), (0, 0)))
        rmat = jnp.asarray(_repeat_matrix(bt, rep))
        kernel = _kernel_expand
        in_specs = [
            pl.BlockSpec((bt, W), lambda i: (i, 0)),       # x tile (lane-dense)
            pl.BlockSpec((bt_s, W), lambda i: (i, 0)),     # compact pe table tile
            pl.BlockSpec((bt, bt_s), lambda i: (0, 0)),    # sublane repeat matrix
            pl.BlockSpec((1, W), lambda i: (0, 0)),        # gamma (tiled to W lanes)
            pl.BlockSpec((1, W), lambda i: (0, 0)),        # beta
            pl.BlockSpec((W, W), lambda i: (0, 0)),        # segment-averaging matrix
        ]
        args = (x_f, pe_f, rmat, gamma_t, beta_t, avg)
    else:
        kernel = _kernel_direct
        in_specs = [
            pl.BlockSpec((bt, W), lambda i: (i, 0)),       # x tile (lane-dense)
            pl.BlockSpec((bt, W), lambda i: (i, 0)),       # pe tile (1:1 with x rows)
            pl.BlockSpec((1, W), lambda i: (0, 0)),        # gamma
            pl.BlockSpec((1, W), lambda i: (0, 0)),        # beta
            pl.BlockSpec((W, W), lambda i: (0, 0)),        # segment-averaging matrix
        ]
        args = (x_f, pe_f, gamma_t, beta_t, avg)

    out = pl.pallas_call(
        kernel,
        out_shape=jax.ShapeDtypeStruct((n_lrows, W), out_dtype),
        grid_spec=pltpu.PrefetchScalarGridSpec(
            num_scalar_prefetch=0,
            grid=grid,
            in_specs=in_specs,
            out_specs=pl.BlockSpec((bt, W), lambda i: (i, 0)),
        ),
        compiler_params=pltpu.CompilerParams(
            dimension_semantics=("parallel",),
            vmem_limit_bytes=32 * 1024 * 1024,
        ),
    )(*args)

    out_rows = out.reshape(n_lrows * G, D)
    if n_pad_rows:
        out_rows = out_rows[:n_rows]
    return out_rows.reshape(S, B, D)


def _reference(x, pos_embed_w, gamma, beta):
    S = x.shape[0]
    y = x + pos_embed_w[:S][:, None, :]
    u = jnp.mean(y, axis=-1, keepdims=True)
    s = jnp.mean((y - u) ** 2, axis=-1, keepdims=True)
    return gamma * ((y - u) / jnp.sqrt(s + VAR_EPS)) + beta


if __name__ == "__main__":
    key = jax.random.PRNGKey(0)
    k_emb, k_g, k_b, k0, k1, k2, k3 = jax.random.split(key, 7)

    # nn.Embedding(max_len, d_model) default init ~ N(0, 1); deterministic here.
    pos_embed_w = jax.random.normal(k_emb, (MAX_LEN, D_MODEL), dtype=jnp.float32)
    gamma = 1.0 + 0.1 * jax.random.normal(k_g, (D_MODEL,), dtype=jnp.float32)
    beta = 0.1 * jax.random.normal(k_b, (D_MODEL,), dtype=jnp.float32)

    cases = [
        (8, 2),   # fallback pe path (B % G != 0), no padding, zero-copy reshapes
        (5, 3),   # fallback pe path, odd sizes -> <= G-1 padded rows
        (8, 4),   # compact pe table, rep = 1 (B == G), direct kernel
        (6, 8),   # compact pe table + in-kernel sublane expansion (rep = 2)
    ]
    for (S, B), kx in zip(cases, (k0, k1, k2, k3)):
        x = jax.random.normal(kx, (S, B, D_MODEL), dtype=jnp.float32)
        out = jax.block_until_ready(
            learned_positional_encoding(x, pos_embed_w, gamma, beta))
        ref = _reference(x, pos_embed_w, gamma, beta)
        assert out.shape == (S, B, D_MODEL)
        assert jnp.allclose(out, ref, atol=5e-5, rtol=5e-5), \
            f"mismatch vs reference (S={S}, B={B})"

    print("KERNEL_OK")
</pallas_src>

<mosaic_0001>
module attributes {stable_mosaic.version = 11 : i64} {
  func.func @_kernel_direct(%arg0: i32, %arg1: memref<4x128xf32, #tpu.memory_space<vmem>>, %arg2: memref<4x128xf32, #tpu.memory_space<vmem>>, %arg3: memref<1x128xf32, #tpu.memory_space<vmem>>, %arg4: memref<1x128xf32, #tpu.memory_space<vmem>>, %arg5: memref<128x128xf32, #tpu.memory_space<vmem>>, %arg6: memref<4x128xf32, #tpu.memory_space<vmem>>) attributes {dimension_semantics = [#tpu.dimension_semantics<parallel>], iteration_bounds = array<i64: 1>, scalar_prefetch = 0 : i64, scratch_operands = 0 : i64, tpu.core_type = #tpu.core_type<tc>, window_params = [{transform_indices = @transform_0, window_bounds = array<i64: 4, 128>}, {transform_indices = @transform_1, window_bounds = array<i64: 4, 128>}, {pipeline_mode = #tpu.pipeline_mode<synchronous>, transform_indices = @transform_2, window_bounds = array<i64: 1, 128>}, {pipeline_mode = #tpu.pipeline_mode<synchronous>, transform_indices = @transform_3, window_bounds = array<i64: 1, 128>}, {pipeline_mode = #tpu.pipeline_mode<synchronous>, transform_indices = @transform_4, window_bounds = array<i64: 128, 128>}, {transform_indices = @transform_5, window_bounds = array<i64: 4, 128>}]} {
    %c0 = arith.constant 0 : index
    %c0_0 = arith.constant 0 : index
    %0 = vector.load %arg1[%c0, %c0_0] : memref<4x128xf32, #tpu.memory_space<vmem>>, vector<4x128xf32>
    %c0_1 = arith.constant 0 : index
    %c0_2 = arith.constant 0 : index
    %1 = vector.load %arg2[%c0_1, %c0_2] : memref<4x128xf32, #tpu.memory_space<vmem>>, vector<4x128xf32>
    %2 = arith.addf %0, %1 : vector<4x128xf32>
    %c0_3 = arith.constant 0 : index
    %c0_4 = arith.constant 0 : index
    %3 = vector.load %arg3[%c0_3, %c0_4] : memref<1x128xf32, #tpu.memory_space<vmem>>, vector<1x128xf32>
    %c0_5 = arith.constant 0 : index
    %c0_6 = arith.constant 0 : index
    %4 = vector.load %arg4[%c0_5, %c0_6] : memref<1x128xf32, #tpu.memory_space<vmem>>, vector<1x128xf32>
    %c0_7 = arith.constant 0 : index
    %c0_8 = arith.constant 0 : index
    %5 = vector.load %arg5[%c0_7, %c0_8] : memref<128x128xf32, #tpu.memory_space<vmem>>, vector<128x128xf32>
    %cst = arith.constant dense<0.000000e+00> : vector<4x128xf32>
    %6 = tpu.matmul %2, %5, %cst {dimension_numbers = #tpu.dot_dimension_numbers<[1], [0], [0], [1], [0, 0, 1, 1], [], []>, precision = #tpu.contract_precision<fp32>} : vector<4x128xf32>, vector<128x128xf32>, vector<4x128xf32> -> vector<4x128xf32>
    %7 = arith.mulf %2, %2 : vector<4x128xf32>
    %cst_9 = arith.constant dense<0.000000e+00> : vector<4x128xf32>
    %8 = tpu.matmul %7, %5, %cst_9 {dimension_numbers = #tpu.dot_dimension_numbers<[1], [0], [0], [1], [0, 0, 1, 1], [], []>, precision = #tpu.contract_precision<fp32>} : vector<4x128xf32>, vector<128x128xf32>, vector<4x128xf32> -> vector<4x128xf32>
    %9 = arith.mulf %6, %6 : vector<4x128xf32>
    %10 = arith.subf %8, %9 : vector<4x128xf32>
    %cst_10 = arith.constant 0.000000e+00 : f32
    %11 = vector.broadcast %cst_10 : f32 to vector<4x128xf32>
    %12 = arith.maximumf %10, %11 : vector<4x128xf32>
    %cst_11 = arith.constant 9.99999996E-13 : f32
    %13 = vector.broadcast %cst_11 : f32 to vector<4x128xf32>
    %14 = arith.addf %12, %13 : vector<4x128xf32>
    %15 = math.rsqrt %14 : vector<4x128xf32>
    %16 = arith.subf %2, %6 : vector<4x128xf32>
    %17 = vector.broadcast %3 : vector<1x128xf32> to vector<4x128xf32>
    %18 = arith.mulf %15, %17 : vector<4x128xf32>
    %19 = arith.mulf %16, %18 : vector<4x128xf32>
    %20 = vector.broadcast %4 : vector<1x128xf32> to vector<4x128xf32>
    %21 = arith.addf %19, %20 : vector<4x128xf32>
    %c0_12 = arith.constant 0 : index
    %c0_13 = arith.constant 0 : index
    %22 = vector.load %arg6[%c0_12, %c0_13] : memref<4x128xf32, #tpu.memory_space<vmem>>, vector<4x128xf32>
    tpu.vector_store %arg6[%c0_12, %c0_13], %21 {strides = array<i32>} : memref<4x128xf32, #tpu.memory_space<vmem>>, vector<4x128xf32>,
    return
  }
  func.func @transform_0(%arg0: i32) -> (i32, i32) {
    %c0_i32 = arith.constant 0 : i32
    %c0_i32_0 = arith.constant 0 : i32
    return %arg0, %c0_i32 : i32, i32
  }
  func.func @transform_1(%arg0: i32) -> (i32, i32) {
    %c0_i32 = arith.constant 0 : i32
    %c0_i32_0 = arith.constant 0 : i32
    return %arg0, %c0_i32 : i32, i32
  }
  func.func @transform_2(%arg0: i32) -> (i32, i32) {
    %c0_i32 = arith.constant 0 : i32
    %c0_i32_0 = arith.constant 0 : i32
    %c0_i32_1 = arith.constant 0 : i32
    return %c0_i32, %c0_i32_0 : i32, i32
  }
  func.func @transform_3(%arg0: i32) -> (i32, i32) {
    %c0_i32 = arith.constant 0 : i32
    %c0_i32_0 = arith.constant 0 : i32
    %c0_i32_1 = arith.constant 0 : i32
    return %c0_i32, %c0_i32_0 : i32, i32
  }
  func.func @transform_4(%arg0: i32) -> (i32, i32) {
    %c0_i32 = arith.constant 0 : i32
    %c0_i32_0 = arith.constant 0 : i32
    %c0_i32_1 = arith.constant 0 : i32
    return %c0_i32, %c0_i32_0 : i32, i32
  }
  func.func @transform_5(%arg0: i32) -> (i32, i32) {
    %c0_i32 = arith.constant 0 : i32
    %c0_i32_0 = arith.constant 0 : i32
    return %arg0, %c0_i32 : i32, i32
  }
}

</mosaic_0001>

<bundles_post_ra>
// kernel: tpu_custom_call.1
= control target key start
LH: loop header
LB: loop body
LE: loop exit
PB: predicated region body
PF: predicated region fallthrough
CT: control target
= control target key end

     0   :  { %10 = vsyncpa [#allocation3], 0  ;;  %s1380_s0 = inlined_call_operand.hbm [shape: f32[4,128], index: 0, kind: input, shape index: {}]   ;;  %s1381_s1 = inlined_call_operand.hbm [shape: f32[4,128], index: 1, kind: input, shape index: {}]   ;;  %s1382_s2 = inlined_call_operand.vmem [shape: f32[1,128], index: 2, kind: input, shape index: {}]   ;;  %s1383_s3 = inlined_call_operand.vmem [shape: f32[1,128], index: 3, kind: input, shape index: {}]   ;;  %s1384_s4 = inlined_call_operand.hbm [shape: f32[128,128], index: 4, kind: input, shape index: {}]   ;;  %s1385_s5 = inlined_call_operand.hbm [shape: f32[4,128], index: 5, kind: output, shape index: {}]  }
   0x1   :  { %11 = vsyncpa [#allocation6], 0  ;;  %s29_s20 = sshll.u32 %s1381_s1, 4  ;;  %s30_s20 = int_to_ptr.hbm [resolvable:$true] %s29_s20 }
   0x2   :  { %12 = vsyncpa [#allocation4], 0  ;;  %s923_s21 = smov [#allocation5]   ;;  %s18_s25 = sshll.u32 %s1380_s0, 4  ;;  %s19_s25 = int_to_ptr.hbm [resolvable:$true] %s18_s25 }
   0x3   :  { %s31_s22 = sshll.u32 %s923_s21, 4  ;;  %s924_s26 = smov [#allocation2]   ;;  %s32_s22 = int_to_ptr.vmem [resolvable:$true] %s31_s22 }
   0x4   :  { %34 = dma.hbm_to_vmem [thread:$0]  %s30_s20, 64, %s32_s22, [#allocation6]  }
   0x5   :  { %s20_s27 = sshll.u32 %s924_s26, 4  ;;  %s43_s30 = sshll.u32 %s1384_s4, 4  ;;  %s21_s27 = int_to_ptr.vmem [resolvable:$true] %s20_s27  ;;  %s44_s30 = int_to_ptr.hbm [resolvable:$true] %s43_s30 }
   0x6   :  { %23 = dma.hbm_to_vmem [thread:$0]  %s19_s25, 64, %s21_s27, [#allocation3]  }
   0x7   :  { %s925_s1 = smov [#allocation7]   ;;  %s926_s7 = smov 128  }
   0x8   :  { %s45_s6 = sshll.u32 %s925_s1, 4  ;;  %s927_s8 = smov 8   ;;  %s46_s6 = int_to_ptr.vmem [resolvable:$true] %s45_s6 }
   0x9   :  { %51 = dma.hbm_to_vmem [thread:$0]  %s44_s30, 2048, %s46_s6, [#allocation6], %s926_s7, %s926_s7, %s927_s8  }
   0xa   :  { %917 = dma.done.wait [#allocation3], 64  }
   0xb   :  { %918 = vsyncadd [#allocation3], 4294967232 }
   0xc   :  { %919 = dma.done.wait [#allocation6], 2112  }
   0xd   :  { %920 = vsyncadd [#allocation6], 4294965184  ;;  %v84_v0 = vld [vmem:[#allocation7 + $0x78] sm:$0xff]  ;;  %v83_v1 = vld [vmem:[#allocation7 + $0x70] sm:$0xff]  ;;  %s928_s11 = smov [#allocation8]   ;;  %s800_s15 = sshll.u32 %s1385_s5, 4  ;;  %s801_s15 = int_to_ptr.hbm [resolvable:$true] %s800_s15 }
   0xe   :  { %v82_v2 = vld [vmem:[#allocation7 + $0x68] sm:$0xff]  ;;  %v968_v3 = vand.u32 4294901760, %v84_v0  ;;  %v970_v4 = vand.u32 4294901760, %v83_v1  ;;  %v81_v6 = vld [vmem:[#allocation7 + $0x60] sm:$0xff]  ;;  %v80_v7 = vld [vmem:[#allocation7 + $0x58] sm:$0xff]  ;;  %s798_s12 = sshll.u32 %s928_s11, 4  ;;  %s799_s12 = int_to_ptr.vmem [resolvable:$true] %s798_s12 }
   0xf   :  { %v972_v5 = vand.u32 4294901760, %v82_v2  ;;  %v79_v8 = vld [vmem:[#allocation7 + $0x50] sm:$0xff]  ;;  %v974_v9 = vand.u32 4294901760, %v81_v6  ;;  %v976_v10 = vand.u32 4294901760, %v80_v7  ;;  %v78_v12 = vld [vmem:[#allocation7 + $0x48] sm:$0xff]  ;;  %v77_v13 = vld [vmem:[#allocation7 + $0x40] sm:$0xff] }
  0x10   :  { %v978_v11 = vand.u32 4294901760, %v79_v8  ;;  %86 = vmatpush.msra.mxu0 %v968_v3  ;;  %v982_v14 = vsub.f32 %v84_v0, %v968_v3  ;;  %v985_v15 = vsub.f32 %v83_v1, %v970_v4  ;;  %282 = vmatpush.msra.mxu3 %v968_v3  ;;  %v991_v17 = vand.u32 4294901760, %v78_v12  ;;  %v76_v21 = vld [vmem:[#allocation7 + $0x38] sm:$0xff]  ;;  %v75_v34 = vld [vmem:[#allocation7 + $0x30] sm:$0xff]  ;;  %v74_v35 = vld [vmem:[#allocation7 + $0x28] sm:$0xff] }
  0x11   :  { %v989_v16 = vsub.f32 %v82_v2, %v972_v5  ;;  %v994_v18 = vsub.f32 %v81_v6, %v974_v9  ;;  %v997_v19 = vsub.f32 %v80_v7, %v976_v10  ;;  %v1013_v25 = vand.u32 4294901760, %v77_v13  ;;  %v73_v42 = vld [vmem:[#allocation7 + $0x20] sm:$0xff]  ;;  %v72_v48 = vld [vmem:[#allocation7 + $0x18] sm:$0xff]  ;;  %v71_v54 = vld [vmem:[#allocation7 + $0x10] sm:$0xff] }
  0x12   :  { %v1000_v20 = vsub.f32 %v79_v8, %v978_v11  ;;  %229 = vmatpush.msra.mxu2 %v982_v14  ;;  %88 = vmatpush.msra.mxu0 %v970_v4  ;;  %v1005_v22 = vand.u32 4294901760, %v982_v14  ;;  %v1008_v23 = vand.u32 4294901760, %v985_v15  ;;  %v1023_v28 = vsub.f32 %v78_v12, %v991_v17  ;;  %v70_v60 = vld [vmem:[#allocation7 + $0x8] sm:$0xff]  ;;  %v69_v1 = vld [vmem:[#allocation7] sm:$0xff] }
  0x13   :  { %v1011_v24 = vand.u32 4294901760, %v989_v16  ;;  %284 = vmatpush.msra.mxu3 %v970_v4  ;;  %v1017_v26 = vand.u32 4294901760, %v994_v18  ;;  %v1020_v27 = vand.u32 4294901760, %v997_v19  ;;  %v1033_v32 = vand.u32 4294901760, %v76_v21 }
  0x14   :  { %232 = vmatpush.msra.mxu2 %v985_v15  ;;  %90 = vmatpush.msra.mxu0 %v972_v5  ;;  %v129_v29 = vsub.f32 %v982_v14, %v1005_v22  ;;  %v135_v30 = vsub.f32 %v985_v15, %v1008_v23  ;;  %v1037_v33 = vand.u32 4294901760, %v1000_v20  ;;  %v1048_v39 = vsub.f32 %v77_v13, %v1013_v25 }
  0x15   :  { %v141_v31 = vsub.f32 %v989_v16, %v1011_v24  ;;  %286 = vmatpush.msra.mxu3 %v972_v5  ;;  %v147_v38 = vsub.f32 %v994_v18, %v1017_v26  ;;  %v153_v40 = vsub.f32 %v997_v19, %v1020_v27  ;;  %v1054_v41 = vand.u32 4294901760, %v1023_v28 }
  0x16   :  { %v1039_v36 = vand.u32 4294901760, %v129_v29  ;;  %235 = vmatpush.msra.mxu2 %v989_v16  ;;  %92 = vmatpush.msra.mxu0 %v974_v9  ;;  %v1043_v37 = vand.u32 4294901760, %v135_v30  ;;  %v1061_v44 = vsub.f32 %v76_v21, %v1033_v32  ;;  %v1063_v45 = vand.u32 4294901760, %v75_v34 }
  0x17   :  { %288 = vmatpush.msra.mxu3 %v974_v9  ;;  %v1058_v43 = vand.u32 4294901760, %v141_v31  ;;  %v1065_v46 = vand.u32 4294901760, %v74_v35  ;;  %v159_v47 = vsub.f32 %v1000_v20, %v1037_v33  ;;  %v1073_v49 = vand.u32 4294901760, %v147_v38 }
  0x18   :  { %131 = vmatpush.msra.mxu1 %v1039_v36  ;;  %238 = vmatpush.msra.mxu2 %v994_v18  ;;  %v1076_v50 = vand.u32 4294901760, %v1048_v39  ;;  %v1079_v51 = vsub.f32 %v75_v34, %v1063_v45  ;;  %v1081_v52 = vand.u32 4294901760, %v73_v42  ;;  %v165_v53 = vsub.f32 %v1023_v28, %v1054_v41 }
  0x19   :  { %94 = vmatpush.msra.mxu0 %v976_v10  ;;  %290 = vmatpush.msra.mxu3 %v976_v10  ;;  %v1089_v55 = vand.u32 4294901760, %v153_v40  ;;  %v1092_v56 = vand.u32 4294901760, %v1061_v44  ;;  %v1095_v57 = vsub.f32 %v74_v35, %v1065_v46  ;;  %v1097_v58 = vand.u32 4294901760, %v72_v48 }
  0x1a   :  { %137 = vmatpush.msra.mxu1 %v1043_v37  ;;  %241 = vmatpush.msra.mxu2 %v997_v19  ;;  %v1100_v59 = vand.u32 4294901760, %v159_v47  ;;  %v171_v61 = vsub.f32 %v1048_v39, %v1076_v50  ;;  %v1108_v62 = vand.u32 4294901760, %v1079_v51  ;;  %v1111_v63 = vsub.f32 %v73_v42, %v1081_v52 }
  0x1b   :  { %96 = vmatpush.msra.mxu0 %v978_v11  ;;  %292 = vmatpush.msra.mxu3 %v978_v11  ;;  %v1113_v0 = vand.u32 4294901760, %v71_v54  ;;  %v1116_v2 = vand.u32 4294901760, %v165_v53  ;;  %v177_v6 = vsub.f32 %v1061_v44, %v1092_v56  ;;  %v1124_v7 = vand.u32 4294901760, %v1095_v57 }
  0x1c   :  { %143 = vmatpush.msra.mxu1 %v1058_v43  ;;  %244 = vmatpush.msra.mxu2 %v1000_v20  ;;  %1388 = vst [vmem:[#allocation12_spill] sm:$0xff] %v1111_v63  ;;  %v1127_v8 = vsub.f32 %v72_v48, %v1097_v58  ;;  %v1129_v12 = vand.u32 4294901760, %v70_v60  ;;  %v1133_v13 = vand.u32 4294901760, %v69_v1  ;;  %v1137_v21 = vand.u32 4294901760, %v171_v61 }
  0x1d   :  { %98 = vmatpush.msra.mxu0 %v991_v17  ;;  %294 = vmatpush.msra.mxu3 %v991_v17  ;;  %v183_v29 = vsub.f32 %v1079_v51, %v1108_v62  ;;  %v1142_v30 = vand.u32 4294901760, %v1111_v63  ;;  %v1145_v31 = vsub.f32 %v71_v54, %v1113_v0  ;;  %v1151_v34 = vand.u32 4294901760, %v177_v6 }
  0x1e   :  { %149 = vmatpush.msra.mxu1 %v1073_v49  ;;  %247 = vmatpush.msra.mxu2 %v1023_v28  ;;  %1389 = vst [vmem:[#allocation13_spill] sm:$0xff] %v1127_v8  ;;  %v189_v35 = vsub.f32 %v1095_v57, %v1124_v7  ;;  %v1156_v38 = vand.u32 4294901760, %v1127_v8  ;;  %v1159_v40 = vsub.f32 %v70_v60, %v1129_v12 }
  0x1f   :  { %100 = vmatpush.msra.mxu0 %v1013_v25  ;;  %296 = vmatpush.msra.mxu3 %v1013_v25  ;;  %v1165_v42 = vand.u32 4294901760, %v183_v29  ;;  %v195_v47 = vsub.f32 %v1111_v63, %v1142_v30  ;;  %v1170_v48 = vand.u32 4294901760, %v1145_v31  ;;  %v1173_v53 = vsub.f32 %v69_v1, %v1133_v13 }
  0x20   :  { %155 = vmatpush.msra.mxu1 %v1089_v55  ;;  %250 = vmatpush.msra.mxu2 %v1048_v39  ;;  %v1179_v54 = vand.u32 4294901760, %v189_v35  ;;  %v201_v60 = vsub.f32 %v1127_v8, %v1156_v38  ;;  %v1184_v61 = vand.u32 4294901760, %v1159_v40 }
  0x21   :  { %102 = vmatpush.msra.mxu0 %v1033_v32  ;;  %298 = vmatpush.msra.mxu3 %v1033_v32  ;;  %v1190_v1 = vand.u32 4294901760, %v195_v47  ;;  %v207_v6 = vsub.f32 %v1145_v31, %v1170_v48  ;;  %v1195_v29 = vand.u32 4294901760, %v1173_v53 }
  0x22   :  { %161 = vmatpush.msra.mxu1 %v1100_v59  ;;  %253 = vmatpush.msra.mxu2 %v1061_v44  ;;  %v1201_v35 = vand.u32 4294901760, %v201_v60  ;;  %v213_v47 = vsub.f32 %v1159_v40, %v1184_v61 }
  0x23   :  { %104 = vmatpush.msra.mxu0 %v1063_v45  ;;  %300 = vmatpush.msra.mxu3 %v1063_v45 }
  0x24   :  { %167 = vmatpush.msra.mxu1 %v1116_v2  ;;  %256 = vmatpush.msra.mxu2 %v1079_v51  ;;  %v1217_v60 = vand.u32 4294901760, %v213_v47  ;;  %v64_v47 = vld [vmem:[#allocation2] sm:$0xf] }
  0x25   :  { %106 = vmatpush.msra.mxu0 %v1065_v46  ;;  %302 = vmatpush.msra.mxu3 %v1065_v46 }
  0x26   :  { %173 = vmatpush.msra.mxu1 %v1137_v21  ;;  %259 = vmatpush.msra.mxu2 %v1095_v57 }
  0x27   :  { %108 = vmatpush.msra.mxu0 %v1081_v52  ;;  %304 = vmatpush.msra.mxu3 %v1081_v52 }
  0x28   :  { %179 = vmatpush.msra.mxu1 %v1151_v34  ;;  %262 = vmatpush.msra.mxu2 %v1111_v63  ;;  %v219_v63 = vsub.f32 %v1173_v53, %v1195_v29 }
  0x29   :  { %110 = vmatpush.msra.mxu0 %v1097_v58  ;;  %306 = vmatpush.msra.mxu3 %v1097_v58 }
  0x2a   :  { %185 = vmatpush.msra.mxu1 %v1165_v42  ;;  %265 = vmatpush.msra.mxu2 %v1127_v8  ;;  %v1209_v8 = vand.u32 4294901760, %v207_v6  ;;  %v1223_v6 = vand.u32 4294901760, %v219_v63 }
  0x2b   :  { %112 = vmatpush.msra.mxu0 %v1113_v0  ;;  %308 = vmatpush.msra.mxu3 %v1113_v0 }
  0x2c   :  { %191 = vmatpush.msra.mxu1 %v1179_v54  ;;  %268 = vmatpush.msra.mxu2 %v1145_v31 }
  0x2d   :  { %114 = vmatpush.msra.mxu0 %v1129_v12  ;;  %310 = vmatpush.msra.mxu3 %v1129_v12 }
  0x2e   :  { %197 = vmatpush.msra.mxu1 %v1190_v1  ;;  %271 = vmatpush.msra.mxu2 %v1159_v40 }
  0x2f   :  { %116 = vmatpush.msra.mxu0 %v1133_v13  ;;  %312 = vmatpush.msra.mxu3 %v1133_v13 }
  0x30   :  { %203 = vmatpush.msra.mxu1 %v1201_v35  ;;  %274 = vmatpush.msra.mxu2 %v1173_v53 }
  0x31   :  { %323 = vmatpush.msrb.mxu0 %v1005_v22  ;;  %473 = vmatpush.msrb.mxu3 %v1039_v36  ;;  %v65_v36 = vld [vmem:[#allocation5] sm:$0xf] }
  0x32   :  { %428 = vmatpush.msrb.mxu2 %v968_v3  ;;  %209 = vmatpush.msra.mxu1 %v1209_v8 }
  0x33   :  { %327 = vmatpush.msrb.mxu0 %v1008_v23  ;;  %479 = vmatpush.msrb.mxu3 %v1043_v37  ;;  %v1239_v37 = vadd.f32 %v65_v36, %v64_v47 }
  0x34   :  { %430 = vmatpush.msrb.mxu2 %v970_v4  ;;  %215 = vmatpush.msra.mxu1 %v1217_v60 }
  0x35   :  { %331 = vmatpush.msrb.mxu0 %v1011_v24  ;;  %485 = vmatpush.msrb.mxu3 %v1058_v43  ;;  %v1250_v43 = vand.u32 4294901760, %v1239_v37 }
  0x36   :  { %432 = vmatpush.msrb.mxu2 %v972_v5  ;;  %221 = vmatpush.msra.mxu1 %v1223_v6 }
  0x37   :  { %335 = vmatpush.msrb.mxu0 %v1017_v26  ;;  %491 = vmatpush.msrb.mxu3 %v1073_v49  ;;  %v118_v49 = vsub.f32 %v1239_v37, %v1250_v43 }
  0x38   :  { %390 = vmatpush.msrb.mxu1 %v968_v3  ;;  %434 = vmatpush.msrb.mxu2 %v974_v9 }
  0x39   :  { %339 = vmatpush.msrb.mxu0 %v1020_v27  ;;  %497 = vmatpush.msrb.mxu3 %v1089_v55  ;;  %v119_v55 = vand.u32 4294901760, %v118_v49 }
  0x3a   :  { %392 = vmatpush.msrb.mxu1 %v970_v4  ;;  %436 = vmatpush.msrb.mxu2 %v976_v10 }
  0x3b   :  { %343 = vmatpush.msrb.mxu0 %v1037_v33  ;;  %503 = vmatpush.msrb.mxu3 %v1100_v59  ;;  %v120_v59 = vsub.f32 %v118_v49, %v119_v55 }
  0x3c   :  { %394 = vmatpush.msrb.mxu1 %v972_v5  ;;  %438 = vmatpush.msrb.mxu2 %v978_v11 }
  0x3d   :  { %347 = vmatpush.msrb.mxu0 %v1054_v41  ;;  %509 = vmatpush.msrb.mxu3 %v1116_v2  ;;  %v121_v63 = vand.u32 4294901760, %v120_v59  ;;  %v426_v2 = vmul.f32 %v1239_v37, %v1239_v37 }
  0x3e   :  { %396 = vmatpush.msrb.mxu1 %v974_v9  ;;  %440 = vmatpush.msrb.mxu2 %v991_v17 }
  0x3f   :  { %351 = vmatpush.msrb.mxu0 %v1076_v50  ;;  %515 = vmatpush.msrb.mxu3 %v1137_v21 }
  0x40   :  { %398 = vmatpush.msrb.mxu1 %v976_v10  ;;  %442 = vmatpush.msrb.mxu2 %v1013_v25 }
  0x41   :  { %355 = vmatpush.msrb.mxu0 %v1092_v56  ;;  %521 = vmatpush.msrb.mxu3 %v1151_v34 }
  0x42   :  { %400 = vmatpush.msrb.mxu1 %v978_v11  ;;  %444 = vmatpush.msrb.mxu2 %v1033_v32 }
  0x43   :  { %359 = vmatpush.msrb.mxu0 %v1108_v62  ;;  %527 = vmatpush.msrb.mxu3 %v1165_v42 }
  0x44   :  { %402 = vmatpush.msrb.mxu1 %v991_v17  ;;  %446 = vmatpush.msrb.mxu2 %v1063_v45 }
  0x45   :  { %363 = vmatpush.msrb.mxu0 %v1124_v7  ;;  %533 = vmatpush.msrb.mxu3 %v1179_v54 }
  0x46   :  { %404 = vmatpush.msrb.mxu1 %v1013_v25  ;;  %448 = vmatpush.msrb.mxu2 %v1065_v46 }
  0x47   :  { %367 = vmatpush.msrb.mxu0 %v1142_v30  ;;  %539 = vmatpush.msrb.mxu3 %v1190_v1 }
  0x48   :  { %406 = vmatpush.msrb.mxu1 %v1033_v32  ;;  %450 = vmatpush.msrb.mxu2 %v1081_v52 }
  0x49   :  { %371 = vmatpush.msrb.mxu0 %v1156_v38  ;;  %545 = vmatpush.msrb.mxu3 %v1201_v35 }
  0x4a   :  { %408 = vmatpush.msrb.mxu1 %v1063_v45  ;;  %452 = vmatpush.msrb.mxu2 %v1097_v58 }
  0x4b   :  { %375 = vmatpush.msrb.mxu0 %v1170_v48  ;;  %551 = vmatpush.msrb.mxu3 %v1209_v8 }
  0x4c   :  { %410 = vmatpush.msrb.mxu1 %v1065_v46  ;;  %454 = vmatpush.msrb.mxu2 %v1113_v0 }
  0x4d   :  { %379 = vmatpush.msrb.mxu0 %v1184_v61  ;;  %557 = vmatpush.msrb.mxu3 %v1217_v60 }
  0x4e   :  { %412 = vmatpush.msrb.mxu1 %v1081_v52  ;;  %456 = vmatpush.msrb.mxu2 %v1129_v12 }
  0x4f   :  { %277 = vmatmul.f32.vlgmr.msra.gmra.mxu2 %v118_v49  ;;  %383 = vmatpush.msrb.mxu0 %v1195_v29 }
  0x50   :  { %414 = vmatpush.msrb.mxu1 %v1097_v58  ;;  %458 = vmatpush.msrb.mxu2 %v1133_v13 }
  0x51   :  { %122 = vmatmul.f32.vlgmr.msra.gmra.mxu0 %v121_v63  ;;  %316 = vmatmul.f32.vlgmr.msra.gmra.mxu3 %v119_v55 }
  0x52   :  { %416 = vmatpush.msrb.mxu1 %v1113_v0  ;;  %571 = vmatpush.msra.mxu0 %v982_v14  ;;  %v1307_v14 = vand.u32 4294901760, %v426_v2 }
  0x53   :  { %665 = vmatpush.msra.mxu2 %v1005_v22  ;;  %563 = vmatpush.msrb.mxu3 %v1223_v6 }
  0x54   :  { %418 = vmatpush.msrb.mxu1 %v1129_v12  ;;  %574 = vmatpush.msra.mxu0 %v985_v15 }
  0x55   :  { %223 = vmatmul.f32.vlgmr.msra.gmra.mxu1 %v1250_v43  ;;  %669 = vmatpush.msra.mxu2 %v1008_v23 }
  0x56   :  { %732 = vmatpush.msra.mxu3 %v968_v3  ;;  %420 = vmatpush.msrb.mxu1 %v1133_v13 }
  0x57   :  { %577 = vmatpush.msra.mxu0 %v989_v16  ;;  %673 = vmatpush.msra.mxu2 %v1011_v24 }
  0x58   :  { %624 = vmatpush.msra.mxu1 %v968_v3  ;;  %734 = vmatpush.msra.mxu3 %v970_v4  ;;  %v460_v3 = vsub.f32 %v426_v2, %v1307_v14 }
  0x59   :  { %580 = vmatpush.msra.mxu0 %v994_v18  ;;  %677 = vmatpush.msra.mxu2 %v1017_v26 }
  0x5a   :  { %626 = vmatpush.msra.mxu1 %v970_v4  ;;  %736 = vmatpush.msra.mxu3 %v972_v5  ;;  %v461_v4 = vand.u32 4294901760, %v460_v3 }
  0x5b   :  { %385 = vmatmul.f32.vlgmr.msrb.gmra.mxu0 %v1250_v43  ;;  %681 = vmatpush.msra.mxu2 %v1020_v27 }
  0x5c   :  { %628 = vmatpush.msra.mxu1 %v972_v5  ;;  %583 = vmatpush.msra.mxu0 %v997_v19  ;;  %v462_v5 = vsub.f32 %v460_v3, %v461_v4 }
  0x5d   :  { %738 = vmatpush.msra.mxu3 %v974_v9  ;;  %422 = vmatmul.f32.vlgmr.msrb.gmra.mxu1 %v1250_v43 }
  0x5e   :  { %586 = vmatpush.msra.mxu0 %v1000_v20  ;;  %630 = vmatpush.msra.mxu1 %v974_v9  ;;  %v463_v9 = vand.u32 4294901760, %v462_v5 }
  0x5f   :  { %685 = vmatpush.msra.mxu2 %v1037_v33  ;;  %740 = vmatpush.msra.mxu3 %v976_v10 }
  0x60   :  { %589 = vmatpush.msra.mxu0 %v1023_v28  ;;  %632 = vmatpush.msra.mxu1 %v976_v10  ;;  %v1390_v10 = vld [vmem:[#allocation12_spill] sm:$0xff] }
  0x61   :  { %689 = vmatpush.msra.mxu2 %v1054_v41  ;;  %742 = vmatpush.msra.mxu3 %v978_v11 }
  0x62   :  { %592 = vmatpush.msra.mxu0 %v1048_v39  ;;  %634 = vmatpush.msra.mxu1 %v978_v11  ;;  %v1391_v11 = vld [vmem:[#allocation13_spill] sm:$0xff] }
  0x63   :  { %693 = vmatpush.msra.mxu2 %v1076_v50  ;;  %744 = vmatpush.msra.mxu3 %v991_v17 }
  0x64   :  { %595 = vmatpush.msra.mxu0 %v1061_v44  ;;  %636 = vmatpush.msra.mxu1 %v991_v17 }
  0x65   :  { %697 = vmatpush.msra.mxu2 %v1092_v56  ;;  %746 = vmatpush.msra.mxu3 %v1013_v25 }
  0x66   :  { %598 = vmatpush.msra.mxu0 %v1079_v51  ;;  %638 = vmatpush.msra.mxu1 %v1013_v25 }
  0x67   :  { %701 = vmatpush.msra.mxu2 %v1108_v62  ;;  %748 = vmatpush.msra.mxu3 %v1033_v32 }
  0x68   :  { %601 = vmatpush.msra.mxu0 %v1095_v57  ;;  %640 = vmatpush.msra.mxu1 %v1033_v32 }
  0x69   :  { %705 = vmatpush.msra.mxu2 %v1124_v7  ;;  %750 = vmatpush.msra.mxu3 %v1063_v45 }
  0x6a   :  { %604 = vmatpush.msra.mxu0 %v1390_v10  ;;  %642 = vmatpush.msra.mxu1 %v1063_v45 }
  0x6b   :  { %709 = vmatpush.msra.mxu2 %v1142_v30  ;;  %752 = vmatpush.msra.mxu3 %v1065_v46 }
  0x6c   :  { %464 = vmatmul.f32.vlgmr.msrb.gmra.mxu2 %v463_v9  ;;  %565 = vmatmul.f32.vlgmr.msrb.gmra.mxu3 %v1307_v14 }
  0x6d   :  { %607 = vmatpush.msra.mxu0 %v1391_v11  ;;  %644 = vmatpush.msra.mxu1 %v1065_v46 }
  0x6e   :  { %713 = vmatpush.msra.mxu2 %v1156_v38  ;;  %754 = vmatpush.msra.mxu3 %v1081_v52  ;;  %v818_v38 = vld [vmem:[%s1383_s3] ss:$0 sm:$0xff] }
  0x6f   :  { %610 = vmatpush.msra.mxu0 %v1145_v31  ;;  %646 = vmatpush.msra.mxu1 %v1081_v52 }
  0x70   :  { %717 = vmatpush.msra.mxu2 %v1170_v48  ;;  %756 = vmatpush.msra.mxu3 %v1097_v58 }
  0x71   :  { %613 = vmatpush.msra.mxu0 %v1159_v40  ;;  %648 = vmatpush.msra.mxu1 %v1097_v58 }
  0x72   :  { %721 = vmatpush.msra.mxu2 %v1184_v61  ;;  %758 = vmatpush.msra.mxu3 %v1113_v0 }
  0x73   :  { %616 = vmatpush.msra.mxu0 %v1173_v53  ;;  %650 = vmatpush.msra.mxu1 %v1113_v0 }
  0x74   :  { %725 = vmatpush.msra.mxu2 %v1195_v29  ;;  %760 = vmatpush.msra.mxu3 %v1129_v12 }
  0x75   :  { %619 = vmatmul.f32.vlgmr.msra.gmra.mxu0 %v460_v3  ;;  %727 = vmatmul.f32.vlgmr.msra.gmra.mxu2 %v1307_v14 }
  0x76   :  { %652 = vmatpush.msra.mxu1 %v1129_v12  ;;  %762 = vmatpush.msra.mxu3 %v1133_v13 }
  0x77   :  { %764 = vmatmul.f32.vlgmr.msra.gmra.mxu3 %v1307_v14 }
  0x78   :  { %654 = vmatpush.msra.mxu1 %v1133_v13  ;;  %v817_v13 = vld [vmem:[%s1382_s2] ss:$0 sm:$0xff] }
  0x79   :  { %658 = vmatmul.f32.vlgmr.msra.gmra.mxu1 %v461_v4 }
  0xce   :  { %v123_v15 = vpop.f32.mrf.mxu0 }
  0xd2   :  { %v224_v16 = vpop.f32.mrf.mxu1  ;;  %v278_v18 = vpop.f32.mrf.mxu2 }
  0xd3   :  { %v225_v17 = vadd.f32 %v224_v16, %v123_v15 }
  0xd4   :  { %v317_v19 = vpop.f32.mrf.mxu3 }
  0xd5   :  { %v279_v22 = vadd.f32 %v278_v18, %v225_v17 }
  0xd7   :  { %v318_v24 = vadd.f32 %v317_v19, %v279_v22 }
  0xd8   :  { %v386_v20 = vpop.f32.mrf.mxu0 }
  0xd9   :  { %v387_v32 = vadd.f32 %v386_v20, %v318_v24 }
  0xda   :  { %v423_v23 = vpop.f32.mrf.mxu1 }
  0xdb   :  { %v424_v41 = vadd.f32 %v423_v23, %v387_v32 }
  0xdd   :  { %v768_v51 = vmul.f32 %v424_v41, %v424_v41  ;;  %v782_v31 = vsub.f32 %v1239_v37, %v424_v41 }
  0xef   :  { %v465_v25 = vpop.f32.mrf.mxu2  ;;  %v566_v26 = vpop.f32.mrf.mxu3 }
  0xf0   :  { %v567_v27 = vadd.f32 %v566_v26, %v465_v25 }
  0xf2   :  { %v620_v28 = vpop.f32.mrf.mxu0 }
  0xf3   :  { %v621_v33 = vadd.f32 %v620_v28, %v567_v27 }
  0xf6   :  { %v659_v39 = vpop.f32.mrf.mxu1 }
  0xf7   :  { %v660_v44 = vadd.f32 %v659_v39, %v621_v33 }
  0xf8   :  { %v728_v45 = vpop.f32.mrf.mxu2 }
  0xf9   :  { %v729_v46 = vadd.f32 %v728_v45, %v660_v44 }
  0xfa   :  { %v765_v50 = vpop.f32.mrf.mxu3 }
  0xfb   :  { %v766_v52 = vadd.f32 %v765_v50, %v729_v46 }
  0xfd   :  { %v769_v56 = vsub.f32 %v766_v52, %v768_v51 }
  0xff   :  { %v770_v57 = vmax.f32 %v769_v56, 0.0 }
 0x101   :  { %v771_v58 = vadd.f32 1e-12, %v770_v57 }
 0x103   :  { %819 = vrsqrt.f32 %v771_v58  ;;  %vm778_vm1 = vweird.f32 %v771_v58 }
 0x109   :  { %v820_v62 = vpop.eup %819 }
 0x10a   :  { %v773_v0 = vmul.f32 %v820_v62, %v771_v58  ;;  %vm779_vm0 = vweird.f32 %v820_v62 }
 0x10b   :  { %vm780_vm2 = vmor %vm778_vm1, %vm779_vm0 }
 0x10c   :  { %v774_v7 = vmul.f32 %v820_v62, %v773_v0 }
 0x10e   :  { %v775_v8 = vmul.f32 0.5, %v774_v7 }
 0x110   :  { %v776_v12 = vsub.f32 1.5, %v775_v8 }
 0x112   :  { %v777_v21 = vmul.f32 %v820_v62, %v776_v12 }
 0x114   :  { %v781_v30 = vsel %vm780_vm2, %v820_v62, %v777_v21 }
 0x115   :  { %v786_v34 = vmul.f32 %v817_v13, %v781_v30 }
 0x117   :  { %v787_v40 = vmul.f32 %v786_v34, %v782_v31 }
 0x119   :  { %v791_v42 = vadd.f32 %v818_v38, %v787_v40 }
 0x11b   :  { %792 = vst [vmem:[#allocation8] sm:$0xf] %v791_v42 }
 0x11c   :  { %803 = dma.vmem_to_hbm [thread:$0]  %s799_s12, 64, %s801_s15, [#allocation4]  }
 0x11d   :  { %921 = dma.done.wait [#allocation4], 64  }
 0x11e   :  { %922 = vsyncadd [#allocation4], 4294967232 }
 0x11f   :  { %808 = vsyncpa [#allocation3], 1 }
 0x120   :  { %809 = vsyncpa [#allocation6], 1 }
 0x121   :  { %810 = vsyncpa [#allocation4], 1 }

</bundles_post_ra>
